<compile_context>
chip_gen: v6e
topology: v6e:2x2x1
jax: 0.10.0
libtpu: 0.0.40
codegen_flags: <defaults>
</compile_context>

<pallas_src>
import math

import jax
import jax.numpy as jnp
from jax import lax
from jax.experimental import pallas as pl
from jax.experimental.pallas import tpu as pltpu

# ---------------- sizes ----------------
B        = 2       # batch
N_MELS   = 16      # mel bins
T_AUDIO  = 8       # audio frames
ENC_DIM  = 32      # encoder hidden
D        = 32      # decoder embedding dim
H_MLP    = 64      # decoder MLP hidden
V_BASE   = 126     # base vocab
VOCAB    = V_BASE + 2          # + <|startofaudio|>, <|endofaudio|>
BOA_ID   = V_BASE              # 126
EOA_ID   = V_BASE + 1          # 127
EOS_ID   = 0

# packed decoder-weight column offsets (chosen so no slice crosses a 128-lane tile)
OFF_WLM  = 0                      # [0,128)   lm_head            (D, VOCAB)
OFF_QKV  = OFF_WLM + VOCAB        # [128,224) fused q|k|v        (D, 3D), q pre-scaled
OFF_PROJ = OFF_QKV + 3 * D        # [224,256) audio projection   (ENC_DIM, D)
OFF_WO   = OFF_PROJ + D           # [256,288) attention output   (D, D)
OFF_W1   = OFF_WO + D             # [288,352) MLP up             (D, H_MLP)
W_D_COLS = OFF_W1 + H_MLP         # 352

# packed aux matrix rows (w_enc stacked on top of w2; both are 32 cols wide)
ROW_WENC   = 0                    # [0,16)    encoder weight     (N_MELS, ENC_DIM)
ROW_W2     = N_MELS               # [16,80)   MLP down           (H_MLP, D)
W_AUX_ROWS = N_MELS + H_MLP       # 80 (row offsets stay 8-sublane aligned)

# packed bias / layernorm vector rows (width H_MLP=64, zero-padded)
ROW_BENC, ROW_BPROJ, ROW_B1, ROW_B2 = 0, 1, 2, 3
ROW_LN1G, ROW_LN1B, ROW_LN2G, ROW_LN2B = 4, 5, 6, 7


# =====================================================================
# Fused ALM kernel: mels -> audio embs -> [boa|audio|eoa|text] -> decoder
# block (LN, causal+pad masked attention, LN, GELU MLP) -> lm_head logits
# =====================================================================
def _alm_kernel(lens_ref,                                   # scalar prefetch (SMEM)
                mels_ref, text_ref, spec_ref,               # per-batch / shared inputs
                w_aux_ref, w_d_ref, vecs_ref,               # packed weights
                logits_ref,                                 # output
                x_ref):                                     # VMEM scratch (S, D)
    b = pl.program_id(0)
    vl = lens_ref[b]                       # valid sequence length (audio + real text)

    vecs   = vecs_ref[...]                 # (8, H_MLP)
    b_enc  = vecs[ROW_BENC:ROW_BENC + 1, :ENC_DIM]
    b_proj = vecs[ROW_BPROJ:ROW_BPROJ + 1, :D]
    b1     = vecs[ROW_B1:ROW_B1 + 1, :H_MLP]
    b2     = vecs[ROW_B2:ROW_B2 + 1, :D]
    ln1_g  = vecs[ROW_LN1G:ROW_LN1G + 1, :D]
    ln1_b  = vecs[ROW_LN1B:ROW_LN1B + 1, :D]
    ln2_g  = vecs[ROW_LN2G:ROW_LN2G + 1, :D]
    ln2_b  = vecs[ROW_LN2B:ROW_LN2B + 1, :D]

    w_aux = w_aux_ref[...]                                  # (80, D)
    w_enc = w_aux[ROW_WENC:ROW_WENC + N_MELS, :ENC_DIM]     # (N_MELS, ENC_DIM)
    w2    = w_aux[ROW_W2:ROW_W2 + H_MLP, :D]                # (H_MLP, D)

    # ---- encoder + projection ----
    mels = mels_ref[0]                                                  # (T_AUDIO, N_MELS)
    h = jax.nn.gelu(jnp.dot(mels, w_enc,
                            preferred_element_type=jnp.float32) + b_enc)
    audio = jnp.dot(h, w_d_ref[:ENC_DIM, OFF_PROJ:OFF_PROJ + D],
                    preferred_element_type=jnp.float32) + b_proj        # (T_AUDIO, D)

    # ---- assemble [boa | audio | eoa | text] in VMEM scratch ----
    x_ref[0:1, :]                         = spec_ref[0:1, :]            # boa
    x_ref[1:1 + T_AUDIO, :]               = audio
    x_ref[1 + T_AUDIO:2 + T_AUDIO, :]     = spec_ref[1:2, :]            # eoa
    x_ref[2 + T_AUDIO:, :]                = text_ref[0]                 # text (incl. pad)
    x = x_ref[...]                                                      # (S, D)
    S = x.shape[0]

    def layernorm(hh, g, bb):
        mu = jnp.mean(hh, axis=-1, keepdims=True)
        var = jnp.mean((hh - mu) ** 2, axis=-1, keepdims=True)
        return (hh - mu) * lax.rsqrt(var + 1e-5) * g + bb

    # ---- self attention (fused QKV, scale folded into wq) ----
    hln = layernorm(x, ln1_g, ln1_b)
    qkv = jnp.dot(hln, w_d_ref[:, OFF_QKV:OFF_QKV + 3 * D],
                  preferred_element_type=jnp.float32)                   # (S, 3D)
    q = qkv[:, 0:D]
    k = qkv[:, D:2 * D]
    v = qkv[:, 2 * D:3 * D]

    scores = jnp.dot(q, k.T, preferred_element_type=jnp.float32)        # (S, S)
    row = lax.broadcasted_iota(jnp.int32, (S, S), 0)
    col = lax.broadcasted_iota(jnp.int32, (S, S), 1)
    allowed = (col <= row) & (col < vl)          # causal AND key-not-padded
    scores = jnp.where(allowed, scores, -1e30)

    m = jnp.max(scores, axis=-1, keepdims=True)
    e = jnp.exp(scores - m)
    ssum = jnp.sum(e, axis=-1, keepdims=True)
    p = e * pl.reciprocal(ssum, approx=True)

    attn = jnp.dot(p, v, preferred_element_type=jnp.float32)
    x1 = x + jnp.dot(attn, w_d_ref[:, OFF_WO:OFF_WO + D],
                     preferred_element_type=jnp.float32)

    # ---- MLP ----
    h2 = layernorm(x1, ln2_g, ln2_b)
    mlp = jax.nn.gelu(jnp.dot(h2, w_d_ref[:, OFF_W1:OFF_W1 + H_MLP],
                              preferred_element_type=jnp.float32) + b1)
    mlp = jnp.dot(mlp, w2, preferred_element_type=jnp.float32) + b2
    x2 = x1 + mlp

    # ---- lm_head (128-lane-dense output) ----
    logits_ref[0] = jnp.dot(x2, w_d_ref[:, OFF_WLM:OFF_WLM + VOCAB],
                            preferred_element_type=jnp.float32)


def alm_forward(mels, text_embs, special_embs, valid_lens, w_aux, w_d, vecs):
    Bz = mels.shape[0]
    T_text = text_embs.shape[1]
    S = T_AUDIO + 2 + T_text
    return pl.pallas_call(
        _alm_kernel,
        out_shape=jax.ShapeDtypeStruct((Bz, S, VOCAB), jnp.float32),
        grid_spec=pltpu.PrefetchScalarGridSpec(
            num_scalar_prefetch=1,                          # valid_lens -> SMEM
            grid=(Bz,),
            in_specs=[
                pl.BlockSpec((1, T_AUDIO, N_MELS), lambda b, l: (b, 0, 0)),   # mels
                pl.BlockSpec((1, T_text, D),       lambda b, l: (b, 0, 0)),   # text embs
                pl.BlockSpec((2, D),               lambda b, l: (0, 0)),      # boa/eoa
                pl.BlockSpec((W_AUX_ROWS, D),      lambda b, l: (0, 0)),      # w_enc|w2
                pl.BlockSpec((D, W_D_COLS),        lambda b, l: (0, 0)),      # packed mats
                pl.BlockSpec((8, H_MLP),           lambda b, l: (0, 0)),      # packed vecs
            ],
            out_specs=pl.BlockSpec((1, S, VOCAB), lambda b, l: (b, 0, 0)),
            scratch_shapes=[pltpu.VMEM((S, D), jnp.float32)],
        ),
        compiler_params=pltpu.CompilerParams(
            dimension_semantics=("parallel",)),             # B=2 -> both v7x TCs
    )(valid_lens, mels, text_embs, special_embs, w_aux, w_d, vecs)


# =====================================================================
# Pure-JAX reference (original un-packed math) for a correctness check.
# =====================================================================
def _reference(mels, text_part, boa, eoa, attention_mask, p):
    h = jax.nn.gelu(jnp.einsum("btm,me->bte", mels, p["w_enc"]) + p["b_enc"])
    audio = jnp.einsum("bte,ed->btd", h, p["w_proj"]) + p["b_proj"]
    x = jnp.concatenate([boa, audio, eoa, text_part], axis=1)
    mask = attention_mask.astype(jnp.float32)

    def ln(hh, g, bb):
        mu = hh.mean(-1, keepdims=True)
        var = ((hh - mu) ** 2).mean(-1, keepdims=True)
        return (hh - mu) * lax.rsqrt(var + 1e-5) * g + bb

    hh = ln(x, p["ln1_g"], p["ln1_b"])
    q = hh @ p["wq"]; k = hh @ p["wk"]; v = hh @ p["wv"]
    S = x.shape[1]
    scores = jnp.einsum("bqd,bkd->bqk", q, k) / math.sqrt(D)
    row = jnp.arange(S)[:, None]; col = jnp.arange(S)[None, :]
    allowed = (col <= row)[None] & (mask[:, None, :] > 0.5)
    scores = jnp.where(allowed, scores, -1e30)
    pr = jax.nn.softmax(scores, -1)
    x1 = x + jnp.einsum("bqk,bkd->bqd", pr, v) @ p["wo"]
    h2 = ln(x1, p["ln2_g"], p["ln2_b"])
    x2 = x1 + jax.nn.gelu(h2 @ p["w1"] + p["b1"]) @ p["w2"] + p["b2"]
    return x2 @ p["wlm"]


# =====================================================================
# Main
# =====================================================================
if __name__ == "__main__":
    key = jax.random.PRNGKey(0)
    ks = jax.random.split(key, 16)

    def rnd(k, shape, scale=0.1):
        return (scale * jax.random.normal(k, shape)).astype(jnp.float32)

    params = {
        "w_enc": rnd(ks[0], (N_MELS, ENC_DIM)),
        "b_enc": rnd(ks[1], (1, ENC_DIM)),
        "w_proj": rnd(ks[2], (ENC_DIM, D)),
        "b_proj": rnd(ks[3], (1, D)),
        "wq": rnd(ks[4], (D, D)), "wk": rnd(ks[5], (D, D)),
        "wv": rnd(ks[6], (D, D)), "wo": rnd(ks[7], (D, D)),
        "w1": rnd(ks[8], (D, H_MLP)), "b1": rnd(ks[9], (1, H_MLP)),
        "w2": rnd(ks[10], (H_MLP, D)), "b2": rnd(ks[11], (1, D)),
        "ln1_g": jnp.ones((1, D), jnp.float32), "ln1_b": jnp.zeros((1, D), jnp.float32),
        "ln2_g": jnp.ones((1, D), jnp.float32), "ln2_b": jnp.zeros((1, D), jnp.float32),
        "wlm": rnd(ks[12], (D, VOCAB)),
        "embed": rnd(ks[13], (VOCAB, D)),
    }

    # --- inputs ---
    mels = jax.random.normal(ks[14], (B, T_AUDIO, N_MELS), jnp.float32)

    # TODO(synk): string tokenization (AutoTokenizer) has no Pallas/JAX
    # equivalent; prompts are simulated with fixed token-id lists.
    token_lists = [[5, 7, 11, 13, 17], [3, 9, 21, 2]]
    max_len = max(len(t) for t in token_lists)
    padded_tokens, text_mask = [], []
    for t in token_lists:                          # mirrors ALM._encode_prompts
        pad = max_len - len(t) + 1
        text_mask.append([1] * len(t) + [0] * pad)
        padded_tokens.append(t + [EOS_ID] * pad)
    tokens = jnp.asarray(padded_tokens, jnp.int32)           # [B, T_text]
    text_attention_mask = jnp.asarray(text_mask, jnp.int32)  # [B, T_text]
    T_TEXT = tokens.shape[1]
    S = T_AUDIO + 2 + T_TEXT

    # glue: embedding lookups (gather) — done once outside the kernel
    text_part = params["embed"][tokens]                                   # [B,T_text,D]
    special_embs = jnp.stack([params["embed"][BOA_ID],
                              params["embed"][EOA_ID]], axis=0)           # [2,D]
    boa = jnp.broadcast_to(special_embs[0][None, None, :], (B, 1, D))
    eoa = jnp.broadcast_to(special_embs[1][None, None, :], (B, 1, D))

    attention_mask = jnp.concatenate(
        [jnp.ones((B, T_AUDIO + 2), jnp.int32), text_attention_mask], axis=1)  # [B,S]
    valid_lens = jnp.sum(attention_mask, axis=1).astype(jnp.int32)              # [B]

    # --- one-time weight packing (load-time preprocessing) ---
    scale = 1.0 / math.sqrt(D)
    w_qkv = jnp.concatenate(
        [params["wq"] * scale, params["wk"], params["wv"]], axis=1)       # (D, 3D)
    w_d = jnp.concatenate(                                                # (D, 352)
        [params["wlm"], w_qkv, params["w_proj"], params["wo"], params["w1"]], axis=1)
    w_aux = jnp.concatenate([params["w_enc"], params["w2"]], axis=0)      # (80, D)

    def _pad_cols(v, width):
        return jnp.pad(v, ((0, 0), (0, width - v.shape[1])))

    vecs = jnp.concatenate([                                              # (8, H_MLP)
        _pad_cols(params["b_enc"], H_MLP),
        _pad_cols(params["b_proj"], H_MLP),
        params["b1"],
        _pad_cols(params["b2"], H_MLP),
        _pad_cols(params["ln1_g"], H_MLP),
        _pad_cols(params["ln1_b"], H_MLP),
        _pad_cols(params["ln2_g"], H_MLP),
        _pad_cols(params["ln2_b"], H_MLP),
    ], axis=0)

    # --- fused Pallas kernel: encoder + assembly + decoder + lm_head ---
    logits = alm_forward(mels, text_part, special_embs, valid_lens,
                         w_aux, w_d, vecs)                                # [B,S,VOCAB]
    logits = jax.block_until_ready(logits)

    # sanity check vs pure-JAX reference
    ref = _reference(mels, text_part, boa, eoa, attention_mask, params)
    assert logits.shape == (B, S, VOCAB)
    assert jnp.allclose(logits, ref, rtol=2e-3, atol=2e-3), "mismatch vs reference"

    print("KERNEL_OK")
</pallas_src>

<mosaic_0001>
module attributes {stable_mosaic.version = 11 : i64} {
  func.func @_alm_kernel(%arg0: i32, %arg1: memref<2xi32, #tpu.memory_space<smem>>, %arg2: memref<1x8x16xf32, #tpu.memory_space<vmem>>, %arg3: memref<1x6x32xf32, #tpu.memory_space<vmem>>, %arg4: memref<2x32xf32, #tpu.memory_space<vmem>>, %arg5: memref<80x32xf32, #tpu.memory_space<vmem>>, %arg6: memref<32x352xf32, #tpu.memory_space<vmem>>, %arg7: memref<8x64xf32, #tpu.memory_space<vmem>>, %arg8: memref<1x16x128xf32, #tpu.memory_space<vmem>>, %arg9: memref<16x32xf32, #tpu.memory_space<vmem>>) attributes {dimension_semantics = [#tpu.dimension_semantics<parallel>], iteration_bounds = array<i64: 2>, scalar_prefetch = 1 : i64, scratch_operands = 1 : i64, tpu.core_type = #tpu.core_type<tc>, window_params = [{transform_indices = @transform_0, window_bounds = array<i64: 1, 8, 16>}, {transform_indices = @transform_1, window_bounds = array<i64: 1, 6, 32>}, {pipeline_mode = #tpu.pipeline_mode<synchronous>, transform_indices = @transform_2, window_bounds = array<i64: 2, 32>}, {pipeline_mode = #tpu.pipeline_mode<synchronous>, transform_indices = @transform_3, window_bounds = array<i64: 80, 32>}, {pipeline_mode = #tpu.pipeline_mode<synchronous>, transform_indices = @transform_4, window_bounds = array<i64: 32, 352>}, {pipeline_mode = #tpu.pipeline_mode<synchronous>, transform_indices = @transform_5, window_bounds = array<i64: 8, 64>}, {transform_indices = @transform_6, window_bounds = array<i64: 1, 16, 128>}]} {
    %0 = arith.index_cast %arg0 : i32 to index
    %1 = memref.load %arg1[%0] : memref<2xi32, #tpu.memory_space<smem>>
    %c0 = arith.constant 0 : index
    %c0_0 = arith.constant 0 : index
    %2 = vector.load %arg7[%c0, %c0_0] : memref<8x64xf32, #tpu.memory_space<vmem>>, vector<8x64xf32>
    %3 = vector.extract_strided_slice %2 {offsets = [0, 0], sizes = [1, 32], strides = [1, 1]} : vector<8x64xf32> to vector<1x32xf32>
    %4 = vector.extract_strided_slice %2 {offsets = [1, 0], sizes = [1, 32], strides = [1, 1]} : vector<8x64xf32> to vector<1x32xf32>
    %5 = vector.extract_strided_slice %2 {offsets = [2, 0], sizes = [1, 64], strides = [1, 1]} : vector<8x64xf32> to vector<1x64xf32>
    %6 = vector.extract_strided_slice %2 {offsets = [3, 0], sizes = [1, 32], strides = [1, 1]} : vector<8x64xf32> to vector<1x32xf32>
    %7 = vector.extract_strided_slice %2 {offsets = [4, 0], sizes = [1, 32], strides = [1, 1]} : vector<8x64xf32> to vector<1x32xf32>
    %8 = vector.extract_strided_slice %2 {offsets = [5, 0], sizes = [1, 32], strides = [1, 1]} : vector<8x64xf32> to vector<1x32xf32>
    %9 = vector.extract_strided_slice %2 {offsets = [6, 0], sizes = [1, 32], strides = [1, 1]} : vector<8x64xf32> to vector<1x32xf32>
    %10 = vector.extract_strided_slice %2 {offsets = [7, 0], sizes = [1, 32], strides = [1, 1]} : vector<8x64xf32> to vector<1x32xf32>
    %c0_1 = arith.constant 0 : index
    %c0_2 = arith.constant 0 : index
    %11 = vector.load %arg5[%c0_1, %c0_2] : memref<80x32xf32, #tpu.memory_space<vmem>>, vector<80x32xf32>
    %12 = vector.extract_strided_slice %11 {offsets = [0, 0], sizes = [16, 32], strides = [1, 1]} : vector<80x32xf32> to vector<16x32xf32>
    %13 = vector.extract_strided_slice %11 {offsets = [16, 0], sizes = [64, 32], strides = [1, 1]} : vector<80x32xf32> to vector<64x32xf32>
    %c0_3 = arith.constant 0 : index
    %c0_4 = arith.constant 0 : index
    %c0_5 = arith.constant 0 : index
    %14 = vector.load %arg2[%c0_3, %c0_4, %c0_5] : memref<1x8x16xf32, #tpu.memory_space<vmem>>, vector<1x8x16xf32>
    %15 = vector.shape_cast %14 : vector<1x8x16xf32> to vector<8x16xf32>
    %cst = arith.constant dense<0.000000e+00> : vector<8x32xf32>
    %16 = tpu.matmul %15, %12, %cst {dimension_numbers = #tpu.dot_dimension_numbers<[1], [0], [0], [1], [0, 0, 1, 1], [], []>} : vector<8x16xf32>, vector<16x32xf32>, vector<8x32xf32> -> vector<8x32xf32>
    %17 = vector.broadcast %3 : vector<1x32xf32> to vector<8x32xf32>
    %18 = arith.addf %16, %17 : vector<8x32xf32>
    %19 = arith.mulf %18, %18 : vector<8x32xf32>
    %20 = arith.mulf %18, %19 : vector<8x32xf32>
    %cst_6 = arith.constant 4.471500e-02 : f32
    %21 = vector.broadcast %cst_6 : f32 to vector<8x32xf32>
    %22 = arith.mulf %21, %20 : vector<8x32xf32>
    %23 = arith.addf %18, %22 : vector<8x32xf32>
    %cst_7 = arith.constant 0.797884583 : f32
    %24 = vector.broadcast %cst_7 : f32 to vector<8x32xf32>
    %25 = arith.mulf %24, %23 : vector<8x32xf32>
    %26 = math.tanh %25 : vector<8x32xf32>
    %cst_8 = arith.constant 1.000000e+00 : f32
    %27 = vector.broadcast %cst_8 : f32 to vector<8x32xf32>
    %28 = arith.addf %27, %26 : vector<8x32xf32>
    %cst_9 = arith.constant 5.000000e-01 : f32
    %29 = vector.broadcast %cst_9 : f32 to vector<8x32xf32>
    %30 = arith.mulf %29, %28 : vector<8x32xf32>
    %31 = arith.mulf %18, %30 : vector<8x32xf32>
    %c0_10 = arith.constant 0 : index
    %c224 = arith.constant 224 : index
    %32 = vector.load %arg6[%c0_10, %c224] : memref<32x352xf32, #tpu.memory_space<vmem>>, vector<32x32xf32>
    %cst_11 = arith.constant dense<0.000000e+00> : vector<8x32xf32>
    %33 = tpu.matmul %31, %32, %cst_11 {dimension_numbers = #tpu.dot_dimension_numbers<[1], [0], [0], [1], [0, 0, 1, 1], [], []>} : vector<8x32xf32>, vector<32x32xf32>, vector<8x32xf32> -> vector<8x32xf32>
    %34 = vector.broadcast %4 : vector<1x32xf32> to vector<8x32xf32>
    %35 = arith.addf %33, %34 : vector<8x32xf32>
    %c0_12 = arith.constant 0 : index
    %c0_13 = arith.constant 0 : index
    %36 = vector.load %arg4[%c0_12, %c0_13] : memref<2x32xf32, #tpu.memory_space<vmem>>, vector<1x32xf32>
    %c0_14 = arith.constant 0 : index
    %c0_15 = arith.constant 0 : index
    %37 = vector.load %arg9[%c0_14, %c0_15] : memref<16x32xf32, #tpu.memory_space<vmem>>, vector<1x32xf32>
    tpu.vector_store %arg9[%c0_14, %c0_15], %36 {strides = array<i32>} : memref<16x32xf32, #tpu.memory_space<vmem>>, vector<1x32xf32>,
    %c1 = arith.constant 1 : index
    %c0_16 = arith.constant 0 : index
    %38 = vector.load %arg9[%c1, %c0_16] : memref<16x32xf32, #tpu.memory_space<vmem>>, vector<8x32xf32>
    tpu.vector_store %arg9[%c1, %c0_16], %35 {strides = array<i32>} : memref<16x32xf32, #tpu.memory_space<vmem>>, vector<8x32xf32>,
    %c1_17 = arith.constant 1 : index
    %c0_18 = arith.constant 0 : index
    %39 = vector.load %arg4[%c1_17, %c0_18] : memref<2x32xf32, #tpu.memory_space<vmem>>, vector<1x32xf32>
    %c9 = arith.constant 9 : index
    %c0_19 = arith.constant 0 : index
    %40 = vector.load %arg9[%c9, %c0_19] : memref<16x32xf32, #tpu.memory_space<vmem>>, vector<1x32xf32>
    tpu.vector_store %arg9[%c9, %c0_19], %39 {strides = array<i32>} : memref<16x32xf32, #tpu.memory_space<vmem>>, vector<1x32xf32>,
    %c0_20 = arith.constant 0 : index
    %c0_21 = arith.constant 0 : index
    %c0_22 = arith.constant 0 : index
    %41 = vector.load %arg3[%c0_20, %c0_21, %c0_22] : memref<1x6x32xf32, #tpu.memory_space<vmem>>, vector<1x6x32xf32>
    %42 = vector.shape_cast %41 : vector<1x6x32xf32> to vector<6x32xf32>
    %c10 = arith.constant 10 : index
    %c0_23 = arith.constant 0 : index
    %43 = vector.load %arg9[%c10, %c0_23] : memref<16x32xf32, #tpu.memory_space<vmem>>, vector<6x32xf32>
    tpu.vector_store %arg9[%c10, %c0_23], %42 {strides = array<i32>} : memref<16x32xf32, #tpu.memory_space<vmem>>, vector<6x32xf32>,
    %c0_24 = arith.constant 0 : index
    %c0_25 = arith.constant 0 : index
    %44 = vector.load %arg9[%c0_24, %c0_25] : memref<16x32xf32, #tpu.memory_space<vmem>>, vector<16x32xf32>
    %cst_26 = arith.constant dense<0.000000e+00> : vector<16xf32>
    %45 = vector.multi_reduction <add>, %44, %cst_26 [1] : vector<16x32xf32> to vector<16xf32>
    %46 = vector.shape_cast %45 : vector<16xf32> to vector<16x1xf32>
    %cst_27 = arith.constant 3.200000e+01 : f32
    %47 = vector.broadcast %cst_27 : f32 to vector<16x1xf32>
    %48 = arith.divf %46, %47 : vector<16x1xf32>
    %49 = vector.broadcast %48 : vector<16x1xf32> to vector<16x32xf32>
    %50 = arith.subf %44, %49 : vector<16x32xf32>
    %51 = arith.mulf %50, %50 : vector<16x32xf32>
    %cst_28 = arith.constant dense<0.000000e+00> : vector<16xf32>
    %52 = vector.multi_reduction <add>, %51, %cst_28 [1] : vector<16x32xf32> to vector<16xf32>
    %53 = vector.shape_cast %52 : vector<16xf32> to vector<16x1xf32>
    %cst_29 = arith.constant 3.200000e+01 : f32
    %54 = vector.broadcast %cst_29 : f32 to vector<16x1xf32>
    %55 = arith.divf %53, %54 : vector<16x1xf32>
    %56 = vector.broadcast %48 : vector<16x1xf32> to vector<16x32xf32>
    %57 = arith.subf %44, %56 : vector<16x32xf32>
    %cst_30 = arith.constant 9.99999974E-6 : f32
    %58 = vector.broadcast %cst_30 : f32 to vector<16x1xf32>
    %59 = arith.addf %55, %58 : vector<16x1xf32>
    %60 = math.rsqrt %59 : vector<16x1xf32>
    %61 = vector.broadcast %60 : vector<16x1xf32> to vector<16x32xf32>
    %62 = arith.mulf %57, %61 : vector<16x32xf32>
    %63 = vector.broadcast %7 : vector<1x32xf32> to vector<16x32xf32>
    %64 = arith.mulf %62, %63 : vector<16x32xf32>
    %65 = vector.broadcast %8 : vector<1x32xf32> to vector<16x32xf32>
    %66 = arith.addf %64, %65 : vector<16x32xf32>
    %c0_31 = arith.constant 0 : index
    %c128 = arith.constant 128 : index
    %67 = vector.load %arg6[%c0_31, %c128] : memref<32x352xf32, #tpu.memory_space<vmem>>, vector<32x96xf32>
    %cst_32 = arith.constant dense<0.000000e+00> : vector<16x96xf32>
    %68 = tpu.matmul %66, %67, %cst_32 {dimension_numbers = #tpu.dot_dimension_numbers<[1], [0], [0], [1], [0, 0, 1, 1], [], []>} : vector<16x32xf32>, vector<32x96xf32>, vector<16x96xf32> -> vector<16x96xf32>
    %69 = vector.extract_strided_slice %68 {offsets = [0, 0], sizes = [16, 32], strides = [1, 1]} : vector<16x96xf32> to vector<16x32xf32>
    %70 = vector.extract_strided_slice %68 {offsets = [0, 32], sizes = [16, 32], strides = [1, 1]} : vector<16x96xf32> to vector<16x32xf32>
    %71 = vector.extract_strided_slice %68 {offsets = [0, 64], sizes = [16, 32], strides = [1, 1]} : vector<16x96xf32> to vector<16x32xf32>
    %72 = tpu.transpose %70, [1, 0] : vector<16x32xf32> -> vector<32x16xf32>
    %cst_33 = arith.constant dense<0.000000e+00> : vector<16x16xf32>
    %73 = tpu.matmul %69, %72, %cst_33 {dimension_numbers = #tpu.dot_dimension_numbers<[1], [0], [0], [1], [0, 0, 1, 1], [], []>} : vector<16x32xf32>, vector<32x16xf32>, vector<16x16xf32> -> vector<16x16xf32>
    %74 = tpu.iota {dimensions = array<i32: 0>} : vector<16x16xi32>
    %75 = tpu.iota {dimensions = array<i32: 1>} : vector<16x16xi32>
    %76 = arith.cmpi sle, %75, %74 : vector<16x16xi32>
    %77 = vector.broadcast %1 : i32 to vector<16x16xi32>
    %78 = arith.cmpi slt, %75, %77 : vector<16x16xi32>
    %79 = arith.andi %76, %78 : vector<16x16xi1>
    %cst_34 = arith.constant -1.000000e+30 : f32
    %80 = vector.broadcast %cst_34 : f32 to vector<16x16xf32>
    %81 = arith.select %79, %73, %80 : vector<16x16xi1>, vector<16x16xf32>
    %cst_35 = arith.constant dense<0xFF800000> : vector<16xf32>
    %82 = vector.multi_reduction <maximumf>, %81, %cst_35 [1] : vector<16x16xf32> to vector<16xf32>
    %83 = vector.shape_cast %82 : vector<16xf32> to vector<16x1xf32>
    %84 = vector.broadcast %83 : vector<16x1xf32> to vector<16x16xf32>
    %85 = arith.subf %81, %84 : vector<16x16xf32>
    %86 = math.exp %85 : vector<16x16xf32>
    %cst_36 = arith.constant dense<0.000000e+00> : vector<16xf32>
    %87 = vector.multi_reduction <add>, %86, %cst_36 [1] : vector<16x16xf32> to vector<16xf32>
    %88 = vector.shape_cast %87 : vector<16xf32> to vector<16x1xf32>
    %89 = tpu.reciprocal %88 {approx = true} : vector<16x1xf32> -> vector<16x1xf32>
    %90 = vector.broadcast %89 : vector<16x1xf32> to vector<16x16xf32>
    %91 = arith.mulf %86, %90 : vector<16x16xf32>
    %cst_37 = arith.constant dense<0.000000e+00> : vector<16x32xf32>
    %92 = tpu.matmul %91, %71, %cst_37 {dimension_numbers = #tpu.dot_dimension_numbers<[1], [0], [0], [1], [0, 0, 1, 1], [], []>} : vector<16x16xf32>, vector<16x32xf32>, vector<16x32xf32> -> vector<16x32xf32>
    %c0_38 = arith.constant 0 : index
    %c256 = arith.constant 256 : index
    %93 = vector.load %arg6[%c0_38, %c256] : memref<32x352xf32, #tpu.memory_space<vmem>>, vector<32x32xf32>
    %cst_39 = arith.constant dense<0.000000e+00> : vector<16x32xf32>
    %94 = tpu.matmul %92, %93, %cst_39 {dimension_numbers = #tpu.dot_dimension_numbers<[1], [0], [0], [1], [0, 0, 1, 1], [], []>} : vector<16x32xf32>, vector<32x32xf32>, vector<16x32xf32> -> vector<16x32xf32>
    %95 = arith.addf %44, %94 : vector<16x32xf32>
    %cst_40 = arith.constant dense<0.000000e+00> : vector<16xf32>
    %96 = vector.multi_reduction <add>, %95, %cst_40 [1] : vector<16x32xf32> to vector<16xf32>
    %97 = vector.shape_cast %96 : vector<16xf32> to vector<16x1xf32>
    %cst_41 = arith.constant 3.200000e+01 : f32
    %98 = vector.broadcast %cst_41 : f32 to vector<16x1xf32>
    %99 = arith.divf %97, %98 : vector<16x1xf32>
    %100 = vector.broadcast %99 : vector<16x1xf32> to vector<16x32xf32>
    %101 = arith.subf %95, %100 : vector<16x32xf32>
    %102 = arith.mulf %101, %101 : vector<16x32xf32>
    %cst_42 = arith.constant dense<0.000000e+00> : vector<16xf32>
    %103 = vector.multi_reduction <add>, %102, %cst_42 [1] : vector<16x32xf32> to vector<16xf32>
    %104 = vector.shape_cast %103 : vector<16xf32> to vector<16x1xf32>
    %cst_43 = arith.constant 3.200000e+01 : f32
    %105 = vector.broadcast %cst_43 : f32 to vector<16x1xf32>
    %106 = arith.divf %104, %105 : vector<16x1xf32>
    %107 = vector.broadcast %99 : vector<16x1xf32> to vector<16x32xf32>
    %108 = arith.subf %95, %107 : vector<16x32xf32>
    %cst_44 = arith.constant 9.99999974E-6 : f32
    %109 = vector.broadcast %cst_44 : f32 to vector<16x1xf32>
    %110 = arith.addf %106, %109 : vector<16x1xf32>
    %111 = math.rsqrt %110 : vector<16x1xf32>
    %112 = vector.broadcast %111 : vector<16x1xf32> to vector<16x32xf32>
    %113 = arith.mulf %108, %112 : vector<16x32xf32>
    %114 = vector.broadcast %9 : vector<1x32xf32> to vector<16x32xf32>
    %115 = arith.mulf %113, %114 : vector<16x32xf32>
    %116 = vector.broadcast %10 : vector<1x32xf32> to vector<16x32xf32>
    %117 = arith.addf %115, %116 : vector<16x32xf32>
    %c0_45 = arith.constant 0 : index
    %c288 = arith.constant 288 : index
    %118 = vector.load %arg6[%c0_45, %c288] : memref<32x352xf32, #tpu.memory_space<vmem>>, vector<32x64xf32>
    %cst_46 = arith.constant dense<0.000000e+00> : vector<16x64xf32>
    %119 = tpu.matmul %117, %118, %cst_46 {dimension_numbers = #tpu.dot_dimension_numbers<[1], [0], [0], [1], [0, 0, 1, 1], [], []>} : vector<16x32xf32>, vector<32x64xf32>, vector<16x64xf32> -> vector<16x64xf32>
    %120 = vector.broadcast %5 : vector<1x64xf32> to vector<16x64xf32>
    %121 = arith.addf %119, %120 : vector<16x64xf32>
    %122 = arith.mulf %121, %121 : vector<16x64xf32>
    %123 = arith.mulf %121, %122 : vector<16x64xf32>
    %cst_47 = arith.constant 4.471500e-02 : f32
    %124 = vector.broadcast %cst_47 : f32 to vector<16x64xf32>
    %125 = arith.mulf %124, %123 : vector<16x64xf32>
    %126 = arith.addf %121, %125 : vector<16x64xf32>
    %cst_48 = arith.constant 0.797884583 : f32
    %127 = vector.broadcast %cst_48 : f32 to vector<16x64xf32>
    %128 = arith.mulf %127, %126 : vector<16x64xf32>
    %129 = math.tanh %128 : vector<16x64xf32>
    %cst_49 = arith.constant 1.000000e+00 : f32
    %130 = vector.broadcast %cst_49 : f32 to vector<16x64xf32>
    %131 = arith.addf %130, %129 : vector<16x64xf32>
    %cst_50 = arith.constant 5.000000e-01 : f32
    %132 = vector.broadcast %cst_50 : f32 to vector<16x64xf32>
    %133 = arith.mulf %132, %131 : vector<16x64xf32>
    %134 = arith.mulf %121, %133 : vector<16x64xf32>
    %cst_51 = arith.constant dense<0.000000e+00> : vector<16x32xf32>
    %135 = tpu.matmul %134, %13, %cst_51 {dimension_numbers = #tpu.dot_dimension_numbers<[1], [0], [0], [1], [0, 0, 1, 1], [], []>} : vector<16x64xf32>, vector<64x32xf32>, vector<16x32xf32> -> vector<16x32xf32>
    %136 = vector.broadcast %6 : vector<1x32xf32> to vector<16x32xf32>
    %137 = arith.addf %135, %136 : vector<16x32xf32>
    %138 = arith.addf %95, %137 : vector<16x32xf32>
    %c0_52 = arith.constant 0 : index
    %c0_53 = arith.constant 0 : index
    %139 = vector.load %arg6[%c0_52, %c0_53] : memref<32x352xf32, #tpu.memory_space<vmem>>, vector<32x128xf32>
    %cst_54 = arith.constant dense<0.000000e+00> : vector<16x128xf32>
    %140 = tpu.matmul %138, %139, %cst_54 {dimension_numbers = #tpu.dot_dimension_numbers<[1], [0], [0], [1], [0, 0, 1, 1], [], []>} : vector<16x32xf32>, vector<32x128xf32>, vector<16x128xf32> -> vector<16x128xf32>
    %c0_55 = arith.constant 0 : index
    %c0_56 = arith.constant 0 : index
    %c0_57 = arith.constant 0 : index
    %141 = vector.load %arg8[%c0_55, %c0_56, %c0_57] : memref<1x16x128xf32, #tpu.memory_space<vmem>>, vector<1x16x128xf32>
    %142 = vector.shape_cast %141 : vector<1x16x128xf32> to vector<16x128xf32>
    %143 = vector.shape_cast %140 : vector<16x128xf32> to vector<1x16x128xf32>
    tpu.vector_store %arg8[%c0_55, %c0_56, %c0_57], %143 {strides = array<i32>} : memref<1x16x128xf32, #tpu.memory_space<vmem>>, vector<1x16x128xf32>,
    return
  }
  func.func @transform_0(%arg0: i32, %arg1: memref<2xi32, #tpu.memory_space<smem>>) -> (i32, i32, i32) {
    %c0_i32 = arith.constant 0 : i32
    %c0_i32_0 = arith.constant 0 : i32
    %c0_i32_1 = arith.constant 0 : i32
    return %arg0, %c0_i32, %c0_i32_0 : i32, i32, i32
  }
  func.func @transform_1(%arg0: i32, %arg1: memref<2xi32, #tpu.memory_space<smem>>) -> (i32, i32, i32) {
    %c0_i32 = arith.constant 0 : i32
    %c0_i32_0 = arith.constant 0 : i32
    %c0_i32_1 = arith.constant 0 : i32
    return %arg0, %c0_i32, %c0_i32_0 : i32, i32, i32
  }
  func.func @transform_2(%arg0: i32, %arg1: memref<2xi32, #tpu.memory_space<smem>>) -> (i32, i32) {
    %c0_i32 = arith.constant 0 : i32
    %c0_i32_0 = arith.constant 0 : i32
    %c0_i32_1 = arith.constant 0 : i32
    return %c0_i32, %c0_i32_0 : i32, i32
  }
  func.func @transform_3(%arg0: i32, %arg1: memref<2xi32, #tpu.memory_space<smem>>) -> (i32, i32) {
    %c0_i32 = arith.constant 0 : i32
    %c0_i32_0 = arith.constant 0 : i32
    %c0_i32_1 = arith.constant 0 : i32
    return %c0_i32, %c0_i32_0 : i32, i32
  }
  func.func @transform_4(%arg0: i32, %arg1: memref<2xi32, #tpu.memory_space<smem>>) -> (i32, i32) {
    %c0_i32 = arith.constant 0 : i32
    %c0_i32_0 = arith.constant 0 : i32
    %c0_i32_1 = arith.constant 0 : i32
    return %c0_i32, %c0_i32_0 : i32, i32
  }
  func.func @transform_5(%arg0: i32, %arg1: memref<2xi32, #tpu.memory_space<smem>>) -> (i32, i32) {
    %c0_i32 = arith.constant 0 : i32
    %c0_i32_0 = arith.constant 0 : i32
    %c0_i32_1 = arith.constant 0 : i32
    return %c0_i32, %c0_i32_0 : i32, i32
  }
  func.func @transform_6(%arg0: i32, %arg1: memref<2xi32, #tpu.memory_space<smem>>) -> (i32, i32, i32) {
    %c0_i32 = arith.constant 0 : i32
    %c0_i32_0 = arith.constant 0 : i32
    %c0_i32_1 = arith.constant 0 : i32
    return %arg0, %c0_i32, %c0_i32_0 : i32, i32, i32
  }
}

</mosaic_0001>

<bundles_post_ra>
// kernel: tpu_custom_call.1
= control target key start
LH: loop header
LB: loop body
LE: loop exit
PB: predicated region body
PF: predicated region fallthrough
CT: control target
= control target key end

     0   :  { %s1959_s0 = inlined_call_operand.vmem [shape: s32[2], index: 0, kind: input, shape index: {}]   ;;  %s1960_s1 = inlined_call_operand.vmem [shape: f32[2,8,16], index: 1, kind: input, shape index: {}]   ;;  %s1961_s2 = inlined_call_operand.vmem [shape: f32[2,6,32], index: 2, kind: input, shape index: {}]   ;;  %s1962_s3 = inlined_call_operand.vmem [shape: f32[2,32], index: 3, kind: input, shape index: {}]   ;;  %s1963_s4 = inlined_call_operand.vmem [shape: f32[80,32], index: 4, kind: input, shape index: {}]   ;;  %s1964_s5 = inlined_call_operand.vmem [shape: f32[32,352], index: 5, kind: input, shape index: {}]   ;;  %s1965_s6 = inlined_call_operand.vmem [shape: f32[8,64], index: 6, kind: input, shape index: {}]   ;;  %s1966_s7 = inlined_call_operand.hbm [shape: f32[2,16,128], index: 7, kind: output, shape index: {}]  }
   0x1   :  { %s12_s26 = sshll.u32 %s1959_s0, 4  ;;  %s13_s26 = int_to_ptr.vmem [resolvable:$true] %s12_s26 }
   0x2   :  { %s1567_s27 = scalar_lea.vmem %s13_s26, 16  ;;  %p1572_p1 = scmp.lt.s32.totalorder %s13_s26, %s13_s26 }
   0x3   :  { %p1568_p0 = scmp.ne.s32.totalorder %s13_s26, %s1567_s27  ;;  %p1573_p2 = scmp.lt.s32.totalorder %s1567_s27, %s1567_s27 }
   0x5   :  { %p1574_p3 = por %p1573_p2, %p1572_p1 }
   0x7   :  { %p1575_p4 = pnand %p1574_p3, %p1568_p0 }
   0x9   :  { %1578 = shalt.err (!%p1575_p4)  }
   0xa   :  { %s1643_s28 = smov [#allocation4]  }
   0xb   :  { %15 = dma.vmem_to_smem %s13_s26, 16, %s1643_s28, [#allocation3] }
   0xc   :  { %1621 = dma.done.wait [#allocation3], 16 }
   0xd   :  { %1622 = vsyncadd [#allocation3], 4294967280 }
   0xe   :  { %17 = sfence }
   0xf   :  { %18 = vsyncpa [#allocation6], 0 }
  0x10   :  { %20 = vsyncpa [#allocation6 + $0x1], 0  ;;  %s1695_s29 = smov 0   ;;  %s1697_s30 = smov 0  }
  0x11   :  { %s1699_s0 = smov 0   ;;  %s1701_s8 = smov 0  }
  0x12 LB: > { %s1716_s9 = sadd.s32 4294967295, %s1641_s8   ;;  %s1322_s10 = sadd.s32 4294967294, %s1641_s8   ;;  %s1641_s8 = sphi %s1701_s8, %s1972_s8   ;;  %s1637_s0 = sphi %s1699_s0, %s1971_s0   ;;  %s1633_s30 = sphi %s1697_s30, %s1970_s30   ;;  %s1629_s29 = sphi %s1695_s29, %s1969_s29  }
  0x13   : > { %s1720_s11 = sadd.s32 1, %s1641_s8   ;;  %s169_s12 = sadd.s32 1, %s1637_s0 }
  0x14   : > { %s166_s13 = ssub.s32 %s1641_s8, %s1720_s11  ;;  %p179_p5 = scmp.ne.s32.totalorder %s1637_s0, %s1633_s30 }
  0x15   : > { %p167_p6 = scmp.eq.s32.totalorder %s166_s13, 0  ;;  %p180_p7 = scmp.eq.s32.totalorder %s1716_s9, 1 }
  0x16   : > { %p185_p8 = scmp.ne.s32.totalorder %s1633_s30, %s1629_s29  ;;  %p186_p9 = scmp.eq.s32.totalorder %s1322_s10, 1 }
  0x17   : > { %s1731_s14 = scalar_select %p167_p6, %s1637_s0, %s169_s12  }
  0x18   : > { %p1733_p10 = por %p180_p7, %p179_p5  ;;  %p1737_p11 = por %p186_p9, %p185_p8 }
  0x19   : > { %p1325_p12 = scmp.ge.s32.totalorder %s1641_s8, 1  ;;  %p230_p13 = scmp.lt.s32.totalorder %s1641_s8, 3 }
  0x1b   : > { %p231_p0 = pnand %p1325_p12, %p230_p13 }
  0x1c   : > { %p263_p1 = scmp.lt.s32.totalorder (!%p231_p0), %s1716_s9, 1  ;;  %s1646_s26 = smov (!%p231_p0), 32  }
  0x1d   : > { %234 = sbr.rel (%p231_p0) target bundleno = 2945 (0xb81), region = 44  ;;  %s271_s12 = sld [smem:[#allocation4 + %s1716_s9]] (!%p231_p0) }
  0x1e   : > { %s1648_s13 = smov (!%p231_p0), 64   ;;  %s1352_s23 = sshll.u32 (!%p231_p0), %s1716_s9, 8 }
  0x22   : > { %v274_v0 = vld [vmem:[%s1963_s4 + $0x8] sm:$0xff]  ;;  %v1644_v1 = vmov 0.0   ;;  %v273_v2 = vld [vmem:[%s1963_s4] sm:$0xff]  ;;  %vm1645_vm0 = vmmov 0   ;;  %v374_v3 = vld [vmem:[%s1964_s5 + $0x50] sm:$0xff]  ;;  %s264_s25 = scalar_select %p263_p1, %s1716_s9, 1  ;;  %v284_v13 = vlaneseq }
  0x23   : > { %1403 = vmatprep.subr.mxu1 %v1644_v1  ;;  %1407 = vmatprep.mubr.msk.f32.mxu1 %vm1645_vm0, %v1644_v1  ;;  %v372_v4 = vld [vmem:[%s1964_s5 + $0x20] sm:$0xff]  ;;  %v373_v5 = vld [vmem:[%s1964_s5 + $0x38] sm:$0xff]  ;;  %vm288_vm1 = vcmask 130048   ;;  %vm476_vm2 = vcmask 259072   ;;  %v371_v6 = vld [vmem:[%s1964_s5 + $0x8] sm:$0xff]  ;;  %vm395_vm3 = vcmask 261120  }
  0x24   : > { %1404 = vmatpush3.msra.mxu1 %v274_v0  ;;  %389 = vrot.lane.b32.xlu0 %v374_v3, %s1646_s26  ;;  %s1327_s10 = sshll.u32 %s264_s25, 3  ;;  %v1773_v14 = vshrl.u32 %v284_v13, 7  ;;  %v1779_v16 = vld [vmem:[%s1965_s6] sm:$0xff]  ;;  %vm470_vm4 = vcmask 253952   ;;  %vm1063_vm10 = vcmask 523264   ;;  %s1649_s9 = smov [#allocation5]  }
  0x25   : > { %1405 = vmatprep.subr.mxu1 %v1644_v1  ;;  %385 = vrot.lane.b32.xlu1 %v372_v4, %s1646_s26  ;;  %s266_s19 = scalar_lea.vmem %s1960_s1, %s1327_s10  ;;  %s270_s22 = scalar_lea.vmem %s1961_s2, %s1327_s10  ;;  %v473_v30 = vld [vmem:[%s1962_s3 + $0x1] sm:$0x1]  ;;  %v469_v31 = vld [vmem:[%s1962_s3] sm:$0x1] }
  0x26   : > { %1406 = vmatpush3.msra.mxu1 %v273_v2  ;;  %1421 = vmatprep.subr.mxu0 %v374_v3  ;;  %v283_v7 = vld [vmem:[%s266_s19] sm:$0xff]  ;;  %v286_v15 = vsub.s32 0, %v1773_v14  ;;  %474 = vst.msk [vmem:[#allocation2 + $0x9] sm:$0x1] %vm470_vm4, %v473_v30  ;;  %471 = vst.msk [vmem:[#allocation2] sm:$0x1] %vm470_vm4, %v469_v31 }
  0x27   : > { %1410 = vmatprep.subr.mxu1 %v1644_v1  ;;  %1422 = vmatpush3.msra.mxu0 %v374_v3  ;;  %v475_v8 = vld [vmem:[%s270_s22] sm:$0x3f]  ;;  %v377_v32 = vsub.s32 1, %v1773_v14  ;;  %v509_v57 = vsub.s32 4, %v1773_v14  ;;  %v515_v58 = vsub.s32 5, %v1773_v14  ;;  %s1647_s10 = smov 96  }
  0x28   : > { %387 = vrot.lane.b32.xlu0 %v373_v5, %s1646_s26  ;;  %1423 = vmatprep.subr.mxu0 %v373_v5  ;;  %477 = vst.msk [vmem:[#allocation2 + $0xa] sm:$0x3f] %vm476_vm2, %v475_v8  ;;  %v287_v17 = vrot.slane %v1779_v16, %v286_v15  ;;  %s260_s19 = sand.u32 1, %s1633_s30  }
  0x29   : > { %1408 = vmatmul.mubr.msk.f32.vlgmr.msra.gmra.mxu1 %vm288_vm1, %v283_v7  ;;  %383 = vrot.lane.b32.xlu1 %v371_v6, %s1646_s26  ;;  %v378_v33 = vrot.slane %v1779_v16, %v377_v32  ;;  %v510_v59 = vrot.slane %v1779_v16, %v509_v57  ;;  %v516_v62 = vrot.slane %v1779_v16, %v515_v58  ;;  %s1326_s20 = sshll.u32 %s260_s19, 4  ;;  %s1917_s26 = scalar_lea.hbm %s1966_s7, %s1352_s23 }
  0x2a   : > { %1418 = vmatprep.mubr.msk.f32.mxu1 %vm1645_vm0, %v1644_v1  ;;  %1424 = vmatpush3.msra.mxu0 %v373_v5  ;;  %s262_s21 = scalar_lea.vmem [#allocation5], %s1326_s20  ;;  %s1919_s27 = scalar_lea.sflag [#allocation6], %s260_s19 }
  0x2b   : > { %1425 = vmatprep.subr.mxu0 %v372_v4  ;;  %s1248_s22 = sshll.u32 %s262_s21, 4  ;;  %s1912_s22 = int_to_ptr.vmem [resolvable:$true] %s1248_s22 }
  0x2c   : > { %1426 = vmatpush3.msra.mxu0 %v372_v4  ;;  %s1579_s28 = scalar_lea.vmem %s1912_s22, 256 }
  0x2d   : > { %1427 = vmatprep.subr.mxu0 %v371_v6  ;;  %p1580_p2 = scmp.ne.s32.totalorder %s1912_s22, %s1579_s28 }
  0x2e   : > { %1428 = vmatpush3.msra.mxu0 %v371_v6 }
  0x2f   : > { %p1581_p3 = pnand %p1580_p2, %p1733_p10 }
  0x31   : > { %p1582_p4 = pneg %p1581_p3 }
  0x96   : > { %v390_v9 = vpop.permute.xlu0 %389 }
  0x97   : > { %1411 = vmatpush3.msra.mxu1 %v390_v9  ;;  %v386_v10 = vpop.permute.xlu1 %385  ;;  %v695_v9 = vadd.s32 8, %v1773_v14 }
  0x98   : > { %1412 = vmatprep.subr.mxu1 %v1644_v1 }
  0x9a   : > { %v388_v11 = vpop.permute.xlu0 %387 }
  0x9b   : > { %1413 = vmatpush3.msra.mxu1 %v388_v11  ;;  %v384_v12 = vpop.permute.xlu1 %383  ;;  %v700_v11 = vstv %s271_s12 }
  0x9c   : > { %1414 = vmatprep.subr.mxu1 %v1644_v1 }
  0x9d   : > { %1415 = vmatpush3.msra.mxu1 %v386_v10  ;;  %v697_v10 = vand.u32 127, %v284_v13 }
  0x9e   : > { %1416 = vmatprep.subr.mxu1 %v1644_v1 }
  0x9f   : > { %1417 = vmatpush3.msra.mxu1 %v384_v12  ;;  %vm699_vm5 = vcmp.le.s32.totalorder %v697_v10, %v695_v9  ;;  %vm701_vm6 = vcmp.lt.s32.totalorder %v697_v10, %v700_v11  ;;  %vm698_vm7 = vcmp.le.s32.totalorder %v697_v10, %v1773_v14  ;;  %v936_v9 = vsub.s32 7, %v1773_v14 }
  0xa0   : > { %vm703_vm8 = vmand %vm699_vm5, %vm701_vm6 }
  0xa1   : > { %vm702_vm9 = vmand %vm698_vm7, %vm701_vm6 }
  0xe9   : > { %v358_v18 = vpop.f32.mrf.mxu1 }
  0xea   : > { %v359_v19 = vadd.f32 %v358_v18, %v287_v17 }
  0xeb   : > { %v1409_v20 = vpop.f32.mrf.mxu1 }
  0xec   : > { %v362_v21 = vmul.f32 %v359_v19, %v359_v19 }
  0xee   : > { %v363_v22 = vmul.f32 %v362_v21, %v359_v19 }
  0xf0   : > { %v364_v23 = vmul.f32 0.044715, %v363_v22 }
  0xf2   : > { %v365_v24 = vadd.f32 %v364_v23, %v359_v19 }
  0xf4   : > { %v366_v25 = vmul.f32 0.7978846, %v365_v24 }
  0xf6   : > { %1545 = vtanh.f32 %v366_v25 }
 0x103   : > { %v1546_v26 = vpop.eup %1545 }
 0x104   : > { %v368_v27 = vadd.f32 1.0, %v1546_v26 }
 0x106   : > { %v369_v28 = vmul.f32 0.5, %v368_v27 }
 0x108   : > { %v370_v29 = vmul.f32 %v369_v28, %v359_v19 }
 0x10a   : > { %1419 = vmatmul.mubr.msk.f32.vlgmr.msra.gmra.mxu1 %vm395_vm3, %v370_v29 }
 0x1ca   : > { %v465_v34 = vpop.f32.mrf.mxu1 }
 0x1cb   : > { %v466_v35 = vadd.f32 %v465_v34, %v378_v33  ;;  %v818_v34 = vld [vmem:[%s1964_s5 + $0x58] sm:$0xff] }
 0x1cc   : > { %v1420_v36 = vpop.f32.mrf.mxu1 }
 0x1cd   : > { %472 = vst.msk [vmem:[#allocation2 + $0x1] sm:$0xff] %vm395_vm3, %v466_v35 }
 0x1d4   : > { %v1792_v37 = vld [vmem:[#allocation2 + $0x8] sm:$0xff]  ;;  %v1794_v38 = vld [vmem:[#allocation2] sm:$0xff] }
 0x1d5   : > { %v483_v39 = vsel %vm395_vm3, %v1792_v37, 0.0  ;;  %v480_v40 = vsel %vm395_vm3, %v1794_v38, 0.0 }
 0x1d6   : > { %484 = vadd.xlane.f32.xlu1 %v483_v39  ;;  %481 = vadd.xlane.f32.xlu0 %v480_v40 }
 0x25f   : > { %v485_v41 = vpop.xlane.xlu1 %484  ;;  %v482_v42 = vpop.xlane.xlu0 %481 }
 0x260   : > { %v488_v43 = vmul.f32 0.03125, %v485_v41  ;;  %v487_v44 = vmul.f32 0.03125, %v482_v42  ;;  %v817_v41 = vld [vmem:[%s1964_s5 + $0x40] sm:$0xff]  ;;  %v816_v42 = vld [vmem:[%s1964_s5 + $0x28] sm:$0xff] }
 0x262   : > { %v490_v45 = vsub.f32 %v1792_v37, %v488_v43  ;;  %v489_v46 = vsub.f32 %v1794_v38, %v487_v44  ;;  %v815_v43 = vld [vmem:[%s1964_s5 + $0x10] sm:$0xff] }
 0x264   : > { %v491_v47 = vmul.f32 %v489_v46, %v489_v46  ;;  %v492_v49 = vmul.f32 %v490_v45, %v490_v45 }
 0x266   : > { %v493_v48 = vsel %vm395_vm3, %v491_v47, 0.0  ;;  %v496_v50 = vsel %vm395_vm3, %v492_v49, 0.0 }
 0x267   : > { %494 = vadd.xlane.f32.xlu0 %v493_v48 }
 0x26b   : > { %497 = vadd.xlane.f32.xlu0 %v496_v50 }
 0x2f0   : > { %v495_v51 = vpop.xlane.xlu0 %494 }
 0x2f1   : > { %v499_v52 = vmul.f32 0.03125, %v495_v51 }
 0x2f3   : > { %v501_v53 = vadd.f32 1e-05, %v499_v52 }
 0x2f4   : > { %v498_v54 = vpop.xlane.xlu0 %497 }
 0x2f5   : > { %1547 = vrsqrt.f32 %v501_v53  ;;  %v500_v55 = vmul.f32 0.03125, %v498_v54 }
 0x2f7   : > { %v502_v56 = vadd.f32 1e-05, %v500_v55 }
 0x2f9   : > { %1549 = vrsqrt.f32 %v502_v56 }
 0x302   : > { %v1548_v60 = vpop.eup %1547 }
 0x303   : > { %v505_v61 = vmul.f32 %v1548_v60, %v489_v46 }
 0x305   : > { %v511_v63 = vmul.f32 %v510_v59, %v505_v61 }
 0x306   : > { %v1550_v0 = vpop.eup %1549 }
 0x307   : > { %v506_v1 = vmul.f32 %v1550_v0, %v490_v45  ;;  %v517_v2 = vadd.f32 %v516_v62, %v511_v63 }
 0x309   : > { %v512_v3 = vmul.f32 %v510_v59, %v506_v1  ;;  %1429 = vmatprep.mubr.msk.f32.mxu0 %vm395_vm3, %v517_v2 }
 0x30b   : > { %v518_v4 = vadd.f32 %v516_v62, %v512_v3 }
 0x30d   : > { %1430 = vmatmul.mubr.msk.f32.vlgmr.msra.gmra.mxu0 %vm395_vm3, %v518_v4 }
 0x3cd   : > { %v1431_v5 = vpop.f32.mrf.mxu0 }
 0x3ce   : > { %608 = vrot.lane.b32.xlu1 %v1431_v5, %s1647_s10 }
 0x3cf   : > { %v595_v6 = vpop.f32.mrf.mxu0 }
 0x3d0   : > { %606 = vrot.lane.b32.xlu0 %v595_v6, %s1647_s10  ;;  %1436 = vmatprep.mubr.msk.f32.mxu1 %vm395_vm3, %v595_v6 }
 0x440   : > { %v609_v7 = vpop.permute.xlu1 %608 }
 0x441   : > { %1432 = vmatprep.subr.msk.mxu1 %vm395_vm3, %v609_v7 }
 0x442   : > { %1433 = vmatpush3.xpose.msk.msra.mxu1 %vm395_vm3, %v609_v7  ;;  %v607_v8 = vpop.permute.xlu0 %606 }
 0x443   : > { %1434 = vmatprep.subr.msk.mxu1 %vm395_vm3, %v607_v8 }
 0x446   : > { %1435 = vmatpush3.xpose.msk.msra.mxu1 %vm395_vm3, %v607_v8 }
 0x449   : > { %1437 = vmatmul.mubr.msk.f32.vlgmr.msra.gmra.mxu1 %vm395_vm3, %v1431_v5 }
 0x509   : > { %v1438_v12 = vpop.f32.mrf.mxu1 }
 0x50a   : > { %v705_v15 = vsel %vm703_vm8, %v1438_v12, -1e+30 }
 0x50b   : > { %v684_v17 = vpop.f32.mrf.mxu1  ;;  %v709_v18 = vsel %vm288_vm1, %v705_v15, -inf }
 0x50c   : > { %v704_v19 = vsel %vm702_vm9, %v684_v17, -1e+30  ;;  %710 = vmax.xlane.f32.xlu0 %v709_v18  ;;  %v937_v17 = vrot.slane %v1779_v16, %v936_v9 }
 0x50d   : > { %v706_v20 = vsel %vm288_vm1, %v704_v19, -inf }
 0x50e   : > { %707 = vmax.xlane.f32.xlu1 %v706_v20 }
 0x595   : > { %v711_v21 = vpop.xlane.xlu0 %710 }
 0x596   : > { %v713_v22 = vsub.f32 %v705_v15, %v711_v21  ;;  %v282_v21 = vld [vmem:[%s1963_s4 + $0x48] sm:$0xff] }
 0x597   : > { %v708_v13 = vpop.xlane.xlu1 %707 }
 0x598   : > { %v716_v23 = vmul.f32 1.442695, %v713_v22  ;;  %v712_v24 = vsub.f32 %v704_v19, %v708_v13  ;;  %v281_v22 = vld [vmem:[%s1963_s4 + $0x40] sm:$0xff]  ;;  %v280_v13 = vld [vmem:[%s1963_s4 + $0x38] sm:$0xff] }
 0x59a   : > { %1551 = vpow2.f32 %v716_v23  ;;  %v714_v25 = vmul.f32 1.442695, %v712_v24  ;;  %v279_v23 = vld [vmem:[%s1963_s4 + $0x30] sm:$0xff]  ;;  %v278_v24 = vld [vmem:[%s1963_s4 + $0x28] sm:$0xff] }
 0x59c   : > { %1553 = vpow2.f32 %v714_v25  ;;  %v277_v25 = vld [vmem:[%s1963_s4 + $0x20] sm:$0xff] }
 0x5a7   : > { %v1552_v26 = vpop.eup %1551 }
 0x5a8   : > { %v721_v27 = vsel %vm288_vm1, %v1552_v26, 0.0 }
 0x5a9   : > { %v1554_v28 = vpop.eup %1553  ;;  %722 = vadd.xlane.f32.xlu0 %v721_v27  ;;  %v275_v27 = vld [vmem:[%s1963_s4 + $0x10] sm:$0xff] }
 0x5aa   : > { %v718_v29 = vsel %vm288_vm1, %v1554_v28, 0.0 }
 0x5ab   : > { %719 = vadd.xlane.f32.xlu1 %v718_v29 }
 0x5bc   : > { %730 = vrot.lane.b32.xlu1 %v1431_v5, %s1648_s13 }
 0x5bf   : > { %728 = vrot.lane.b32.xlu0 %v595_v6, %s1648_s13  ;;  %v930_v6 = vsub.s32 6, %v1773_v14 }
 0x5c1   : > { %v931_v8 = vrot.slane %v1779_v16, %v930_v6 }
 0x632   : > { %v723_v30 = vpop.xlane.xlu0 %722 }
 0x633   : > { %1555 = vrcp.f32 %v723_v30 }
 0x634   : > { %v720_v31 = vpop.xlane.xlu1 %719 }
 0x635   : > { %1557 = vrcp.f32 %v720_v31 }
 0x636   : > { %v729_v33 = vpop.permute.xlu0 %728 }
 0x638   : > { %v731_v32 = vpop.permute.xlu1 %730 }
 0x639   : > { %1439 = vmatprep.subr.mxu0 %v731_v32 }
 0x63a   : > { %1440 = vmatpush3.msra.mxu0 %v731_v32 }
 0x63b   : > { %1441 = vmatprep.subr.mxu0 %v729_v33 }
 0x63c   : > { %1442 = vmatpush3.msra.mxu0 %v729_v33 }
 0x63d   : > { %1446 = vmatprep.subr.mxu0 %v818_v34 }
 0x640   : > { %v1556_v35 = vpop.eup %1555 }
 0x641   : > { %v727_v40 = vmul.f32 %v1556_v35, %v1552_v26  ;;  %v276_v26 = vld [vmem:[%s1963_s4 + $0x18] sm:$0xff] }
 0x642   : > { %v1558_v36 = vpop.eup %1557 }
 0x643   : > { %v726_v39 = vmul.f32 %v1558_v36, %v1554_v28  ;;  %v942_v28 = vsub.s32 2, %v1773_v14 }
 0x645   : > { %1443 = vmatprep.mubr.msk.f32.mxu0 %vm288_vm1, %v726_v39  ;;  %v943_v29 = vrot.slane %v1779_v16, %v942_v28 }
 0x646   : > { %1444 = vmatmul.mubr.msk.f32.vlgmr.msra.gmra.mxu0 %vm288_vm1, %v727_v40 }
 0x647   : > { %1447 = vmatpush3.msra.mxu0 %v818_v34 }
 0x648   : > { %1448 = vmatprep.subr.mxu0 %v817_v41 }
 0x649   : > { %1449 = vmatpush3.msra.mxu0 %v817_v41 }
 0x64a   : > { %1450 = vmatprep.subr.mxu0 %v816_v42 }
 0x64b   : > { %1451 = vmatpush3.msra.mxu0 %v816_v42 }
 0x64c   : > { %1452 = vmatprep.subr.mxu0 %v815_v43 }
 0x64d   : > { %1453 = vmatpush3.msra.mxu0 %v815_v43 }
 0x64e   : > { %1468 = vmatprep.subr.mxu0 %v282_v21 }
 0x706   : > { %v1445_v44 = vpop.f32.mrf.mxu0 }
 0x708   : > { %v806_v45 = vpop.f32.mrf.mxu0 }
 0x709   : > { %1454 = vmatprep.mubr.msk.f32.mxu0 %vm395_vm3, %v806_v45 }
 0x70a   : > { %1455 = vmatmul.mubr.msk.f32.vlgmr.msra.gmra.mxu0 %vm395_vm3, %v1445_v44 }
 0x70b   : > { %1469 = vmatpush3.msra.mxu0 %v282_v21 }
 0x70c   : > { %1470 = vmatprep.subr.mxu0 %v281_v22 }
 0x70d   : > { %1471 = vmatpush3.msra.mxu0 %v281_v22 }
 0x70e   : > { %1472 = vmatprep.subr.mxu0 %v280_v13 }
 0x70f   : > { %1473 = vmatpush3.msra.mxu0 %v280_v13 }
 0x710   : > { %1474 = vmatprep.subr.mxu0 %v279_v23 }
 0x711   : > { %1475 = vmatpush3.msra.mxu0 %v279_v23 }
 0x712   : > { %1476 = vmatprep.subr.mxu0 %v278_v24 }
 0x713   : > { %1477 = vmatpush3.msra.mxu0 %v278_v24 }
 0x714   : > { %1478 = vmatprep.subr.mxu0 %v277_v25 }
 0x715   : > { %1479 = vmatpush3.msra.mxu0 %v277_v25 }
 0x716   : > { %1480 = vmatprep.subr.mxu0 %v276_v26 }
 0x717   : > { %1481 = vmatpush3.msra.mxu0 %v276_v26 }
 0x718   : > { %1482 = vmatprep.subr.mxu0 %v275_v27 }
 0x719   : > { %1483 = vmatpush3.msra.mxu0 %v275_v27 }
 0x7ca   : > { %v1456_v46 = vpop.f32.mrf.mxu0 }
 0x7cb   : > { %v1843_v47 = vadd.f32 %v1456_v46, %v1792_v37 }
 0x7cc   : > { %v891_v48 = vpop.f32.mrf.mxu0 }
 0x7cd   : > { %v1846_v49 = vadd.f32 %v891_v48, %v1794_v38  ;;  %v905_v50 = vsel %vm395_vm3, %v1843_v47, 0.0 }
 0x7ce   : > { %906 = vadd.xlane.f32.xlu0 %v905_v50 }
 0x7cf   : > { %v902_v51 = vsel %vm395_vm3, %v1846_v49, 0.0 }
 0x7d0   : > { %903 = vadd.xlane.f32.xlu1 %v902_v51 }
 0x7e1   : > { %954 = vrot.lane.b32.xlu1 %v818_v34, %s1647_s10 }
 0x7e5   : > { %950 = vrot.lane.b32.xlu1 %v816_v42, %s1647_s10 }
 0x857   : > { %v907_v52 = vpop.xlane.xlu0 %906 }
 0x858   : > { %v909_v53 = vmul.f32 0.03125, %v907_v52 }
 0x859   : > { %v904_v37 = vpop.xlane.xlu1 %903 }
 0x85a   : > { %v911_v54 = vsub.f32 %v1843_v47, %v909_v53  ;;  %v908_v55 = vmul.f32 0.03125, %v904_v37 }
 0x85c   : > { %v910_v38 = vsub.f32 %v1846_v49, %v908_v55  ;;  %v913_v56 = vmul.f32 %v911_v54, %v911_v54  ;;  %v1150_v55 = vld [vmem:[%s1964_s5 + $0x48] sm:$0xff] }
 0x85d   : > { %v955_v57 = vpop.permute.xlu1 %954 }
 0x85e   : > { %v917_v58 = vsel %vm395_vm3, %v913_v56, 0.0  ;;  %v912_v59 = vmul.f32 %v910_v38, %v910_v38  ;;  %1457 = vmatprep.subr.mxu1 %v955_v57  ;;  %v1148_v56 = vld [vmem:[%s1964_s5 + $0x18] sm:$0xff] }
 0x85f   : > { %918 = vadd.xlane.f32.xlu0 %v917_v58  ;;  %1458 = vmatpush3.msra.mxu1 %v955_v57  ;;  %v1147_v57 = vld [vmem:[%s1964_s5] sm:$0xff]  ;;  %v1061_v58 = vsub.s32 3, %v1773_v14 }
 0x860   : > { %v914_v60 = vsel %vm395_vm3, %v912_v59, 0.0 }
 0x861   : > { %915 = vadd.xlane.f32.xlu1 %v914_v60  ;;  %v951_v61 = vpop.permute.xlu1 %950  ;;  %v1062_v59 = vrot.slane %v1779_v16, %v1061_v58 }
 0x872   : > { %948 = vrot.lane.b32.xlu1 %v815_v43, %s1647_s10 }
 0x875   : > { %952 = vrot.lane.b32.xlu0 %v817_v41, %s1647_s10  ;;  %s1583_s10 = sshll.u32 %s1649_s9, 4  ;;  %s1584_s10 = int_to_ptr.vmem [resolvable:$false] %s1583_s10 }
 0x876   : > { %s1585_s12 = scalar_lea.vmem %s1584_s10, 512  ;;  %p1586_p5 = scmp.lt.s32.totalorder %s1912_s22, %s1584_s10 }
 0x877   : > { %p1587_p6 = scmp.lt.s32.totalorder %s1585_s12, %s1579_s28 }
 0x879   : > { %p1588_p7 = por %p1587_p6, %p1586_p5 }
 0x87b   : > { %p1589_p8 = pnand %p1588_p7, %p1582_p4 }
 0x8e8   : > { %v919_v62 = vpop.xlane.xlu0 %918 }
 0x8e9   : > { %v921_v63 = vmul.f32 0.03125, %v919_v62 }
 0x8ea   : > { %v916_v0 = vpop.xlane.xlu1 %915 }
 0x8eb   : > { %v923_v1 = vadd.f32 1e-05, %v921_v63  ;;  %v920_v2 = vmul.f32 0.03125, %v916_v0 }
 0x8ec   : > { %v953_v3 = vpop.permute.xlu0 %952 }
 0x8ed   : > { %1559 = vrsqrt.f32 %v923_v1  ;;  %v922_v4 = vadd.f32 1e-05, %v920_v2  ;;  %1459 = vmatprep.subr.mxu1 %v953_v3 }
 0x8ee   : > { %1460 = vmatpush3.msra.mxu1 %v953_v3  ;;  %v949_v5 = vpop.permute.xlu1 %948 }
 0x8ef   : > { %1561 = vrsqrt.f32 %v922_v4  ;;  %1461 = vmatprep.subr.mxu1 %v951_v61 }
 0x8f0   : > { %1462 = vmatpush3.msra.mxu1 %v951_v61 }
 0x8f1   : > { %1463 = vmatprep.subr.mxu1 %v949_v5 }
 0x8f2   : > { %1464 = vmatpush3.msra.mxu1 %v949_v5 }
 0x8f3   : > { %1487 = vmatprep.subr.mxu1 %v1150_v55 }
 0x8fa   : > { %v1560_v7 = vpop.eup %1559 }
 0x8fb   : > { %v927_v10 = vmul.f32 %v1560_v7, %v911_v54 }
 0x8fc   : > { %v1562_v11 = vpop.eup %1561 }
 0x8fd   : > { %v926_v12 = vmul.f32 %v1562_v11, %v910_v38  ;;  %v933_v15 = vmul.f32 %v931_v8, %v927_v10  ;;  %v1149_v38 = vld [vmem:[%s1964_s5 + $0x30] sm:$0xff] }
 0x8ff   : > { %v932_v18 = vmul.f32 %v931_v8, %v926_v12  ;;  %v939_v20 = vadd.f32 %v937_v17, %v933_v15 }
 0x901   : > { %v938_v19 = vadd.f32 %v937_v17, %v932_v18 }
 0x903   : > { %1465 = vmatprep.mubr.msk.f32.mxu1 %vm395_vm3, %v938_v19 }
 0x904   : > { %1466 = vmatmul.mubr.msk.f32.vlgmr.msra.gmra.mxu1 %vm395_vm3, %v939_v20 }
 0x905   : > { %1488 = vmatpush3.msra.mxu1 %v1150_v55 }
 0x906   : > { %1489 = vmatprep.subr.mxu1 %v1149_v38 }
 0x907   : > { %1490 = vmatpush3.msra.mxu1 %v1149_v38 }
 0x908   : > { %1491 = vmatprep.subr.mxu1 %v1148_v56 }
 0x909   : > { %1492 = vmatpush3.msra.mxu1 %v1148_v56 }
 0x90a   : > { %1493 = vmatprep.subr.mxu1 %v1147_v57 }
 0x90b   : > { %1494 = vmatpush3.msra.mxu1 %v1147_v57 }
 0x9c4   : > { %v1467_v30 = vpop.f32.mrf.mxu1 }
 0x9c5   : > { %v1038_v31 = vadd.f32 %v1467_v30, %v943_v29 }
 0x9c6   : > { %v1032_v32 = vpop.f32.mrf.mxu1 }
 0x9c7   : > { %v1042_v33 = vmul.f32 %v1038_v31, %v1038_v31  ;;  %v1033_v34 = vadd.f32 %v1032_v32, %v943_v29 }
 0x9c9   : > { %v1044_v35 = vmul.f32 %v1042_v33, %v1038_v31  ;;  %v1041_v36 = vmul.f32 %v1033_v34, %v1033_v34 }
 0x9cb   : > { %v1046_v39 = vmul.f32 0.044715, %v1044_v35  ;;  %v1043_v40 = vmul.f32 %v1041_v36, %v1033_v34 }
 0x9cd   : > { %v1048_v41 = vadd.f32 %v1046_v39, %v1038_v31  ;;  %v1045_v42 = vmul.f32 0.044715, %v1043_v40 }
 0x9cf   : > { %v1050_v43 = vmul.f32 0.7978846, %v1048_v41  ;;  %v1047_v44 = vadd.f32 %v1045_v42, %v1033_v34 }
 0x9d1   : > { %1563 = vtanh.f32 %v1050_v43  ;;  %v1049_v45 = vmul.f32 0.7978846, %v1047_v44 }
 0x9d3   : > { %1565 = vtanh.f32 %v1049_v45 }
 0x9de   : > { %v1564_v46 = vpop.eup %1563 }
 0x9df   : > { %v1054_v48 = vadd.f32 1.0, %v1564_v46 }
 0x9e0   : > { %v1566_v50 = vpop.eup %1565 }
 0x9e1   : > { %v1053_v51 = vadd.f32 1.0, %v1566_v50  ;;  %v1056_v52 = vmul.f32 0.5, %v1054_v48 }
 0x9e3   : > { %v1055_v53 = vmul.f32 0.5, %v1053_v51  ;;  %v1058_v54 = vmul.f32 %v1056_v52, %v1038_v31 }
 0x9e5   : > { %v1057_v37 = vmul.f32 %v1055_v53, %v1033_v34 }
 0x9e7   : > { %1484 = vmatprep.mubr.msk.f32.mxu0 %vm1063_vm10, %v1057_v37 }
 0x9e8   : > { %1485 = vmatmul.mubr.msk.f32.vlgmr.msra.gmra.mxu0 %vm1063_vm10, %v1058_v54 }
 0xaa8   : > { %v1486_v60 = vpop.f32.mrf.mxu0 }
 0xaa9   : > { %v1142_v61 = vadd.f32 %v1486_v60, %v1062_v59 }
 0xaaa   : > { %v1136_v62 = vpop.f32.mrf.mxu0 }
 0xaab   : > { %v1137_v63 = vadd.f32 %v1136_v62, %v1062_v59  ;;  %v1146_v1 = vadd.f32 %v1142_v61, %v1843_v47 }
 0xaad   : > { %v1145_v0 = vadd.f32 %v1137_v63, %v1846_v49 }
 0xaaf   : > { %1495 = vmatprep.mubr.msk.f32.mxu1 %vm395_vm3, %v1145_v0 }
 0xab0   : > { %1496 = vmatmul.mubr.msk.f32.vlgmr.msra.gmra.mxu1 %vm395_vm3, %v1146_v1 }
 0xb70   : > { %v1497_v14 = vpop.f32.mrf.mxu1 }
 0xb71   : > { %1233 = vst [vmem:[%s262_s21 + $0x8] sm:$0xff] %v1497_v14 }
 0xb72   : > { %v1223_v16 = vpop.f32.mrf.mxu1 }
 0xb73   : > { %1232 = vst [vmem:[%s262_s21] sm:$0xff] %v1223_v16 }
 0xb74   : > { %1592 = shalt.err (!%p1589_p8)
}
 0xb75   : > { %s1593_s13 = scalar_lea.hbm %s1917_s26, 256  ;;  %s1597_s19 = scalar_lea.hbm %s1966_s7, 512 }
 0xb76   : > { %p1594_p9 = scmp.ne.s32.totalorder %s1917_s26, %s1593_s13  ;;  %p1598_p0 = scmp.lt.s32.totalorder %s1917_s26, %s1966_s7 }
 0xb77   : > { %p1599_p1 = scmp.lt.s32.totalorder %s1597_s19, %s1593_s13 }
 0xb78   : > { %p1595_p12 = pnand %p1594_p9, %p1733_p10 }
 0xb79   : > { %p1600_p2 = por %p1599_p1, %p1598_p0 }
 0xb7a   : > { %p1596_p13 = pneg %p1595_p12 }
 0xb7c   : > { %p1601_p3 = pnand %p1600_p2, %p1596_p13 }
 0xb7e   : > { %1604 = shalt.err (!%p1601_p3)
}
 0xb7f   : > { %s1650_s23 = smov 128   ;;  %s1651_s24 = smov 8  }
 0xb80   : > { %1498 = dma.vmem_to_hbm [thread:$0]  (%p1733_p10), %s1912_s22, 256, %s1917_s26, %s1919_s27, %s1650_s23, %s1650_s23, %s1651_s24  }
 0xb81 PF: > { %p1504_p4 = scmp.ge.s32.totalorder %s1641_s8, 2  ;;  %s1263_s25 = sand.u32 1, %s1629_s29  }
 0xb82   : > { %s1264_s28 = scalar_lea.sflag [#allocation6], %s1263_s25 }
 0xb83   : > { %p1501_p5 = pnand %p1504_p4, %p1737_p11 }
 0xb85   : > { %p1502_p6 = pneg %p1501_p5 }
 0xb87   : > { %1624 = dma.done.wait (%p1502_p6), %s1264_s28, 256  }
 0xb88   : > { %1626 = vsyncadd (%p1502_p6), %s1264_s28, 4294967040  ;;  %p23_p7 = scmp.ge.s32.totalorder %s1720_s11, 4   ;;  %s1969_s29 = smov %s1633_s30 }
 0xb89   : > { %s1970_s30 = smov %s1637_s0  ;;  %s1971_s0 = smov %s1731_s14 }
 0xb8a   : > { %s1972_s8 = smov %s1720_s11  ;;  %25 = sbr.rel (!%p23_p7) target bundleno = 18 (0x12), region = 82 }
 0xb8f   :  { %1269 = vsyncpa [#allocation6], 1 }
 0xb90   :  { %1271 = vsyncpa [#allocation6 + $0x1], 1 }

</bundles_post_ra>
